<compile_context>
chip_gen: v7x
topology: tpu7x:2x2x1
jax: 0.10.0
libtpu: 0.0.40
codegen_flags: <defaults>
</compile_context>

<pallas_src>
from functools import partial

import jax
import jax.numpy as jnp
from jax.experimental import pallas as pl
from jax.experimental.pallas import tpu as pltpu


def _onehot_scale_kernel(scale_ref, labels_ref, out_ref):
    # scale_ref:  (1, 1) f32 in SMEM
    # labels_ref: (TILE_N, 1) int32 in VMEM (broadcast along lanes)
    # out_ref:    (TILE_N, C) f32 in VMEM, C = true num_classes (no padding)
    tn, c = out_ref.shape
    labels = labels_ref[...]                                   # (TILE_N, 1)
    col = jax.lax.broadcasted_iota(jnp.int32, (tn, c), 1)      # (TILE_N, C)
    # Fused one-hot + scale; the VPU compare/select is free filler under the
    # HBM-write-bound roofline.
    out_ref[...] = jnp.where(col == labels, scale_ref[0, 0], jnp.float32(0.0))


def _round_up(x: int, m: int) -> int:
    return ((x + m - 1) // m) * m


def _vmem_capacity_bytes() -> int:
    try:
        return int(pltpu.get_tpu_info().vmem_capacity_bytes)
    except Exception:
        return 64 << 20  # conservative fallback (v7x per-TC VMEM)


def _choose_tile_n(n: int, num_classes: int) -> int:
    if n <= 8:
        # Single full-extent block (block shape == array shape is always legal).
        return max(n, 1)
    row_bytes = num_classes * 4
    vmem_cap = _vmem_capacity_bytes()
    # Target ~2-8 MiB output blocks, generation-aware (v7x: 64 MiB VMEM -> 4 MiB).
    block_target = max(2 << 20, min(8 << 20, vmem_cap // 16))
    tile = max(8, (block_target // row_bytes) // 8 * 8)
    # Keep >= 2 grid blocks so "parallel" can shard rows across v7x's 2 TCs.
    half = max(8, _round_up((n + 1) // 2, 8))
    return min(tile, half)


@partial(jax.jit, static_argnames=("num_classes",))
def _onehot_logits(labels: jax.Array, scale: jax.Array, *, num_classes: int) -> jax.Array:
    n = labels.shape[0]
    c = max(int(num_classes), 1)
    tile_n = _choose_tile_n(n, c)
    grid = (pl.cdiv(n, tile_n),)

    labels_col = labels.reshape(n, 1)
    scale_smem = scale.astype(jnp.float32).reshape(1, 1)

    out_block_bytes = tile_n * c * 4
    lbl_block_bytes = tile_n * 4
    # Double-buffered input + output blocks plus headroom; safe on v5e's 16 MiB
    # scoped default and well under v7x's 64 MiB physical VMEM.
    vmem_limit = max(4 << 20, 2 * (out_block_bytes + lbl_block_bytes) + (1 << 20))

    cost = pl.CostEstimate(
        flops=n * c,                                   # compare+select, ~free
        transcendentals=0,
        bytes_accessed=n * c * 4 + n * 4 + 4,          # true HBM traffic
    )

    return pl.pallas_call(
        _onehot_scale_kernel,
        out_shape=jax.ShapeDtypeStruct((n, c), jnp.float32),
        grid=grid,
        in_specs=[
            pl.BlockSpec(memory_space=pltpu.SMEM),            # scale (whole, SMEM)
            pl.BlockSpec((tile_n, 1), lambda i: (i, 0)),      # labels row tile
        ],
        out_specs=pl.BlockSpec((tile_n, c), lambda i: (i, 0)),  # full-width, unpadded
        compiler_params=pltpu.CompilerParams(
            dimension_semantics=("parallel",),
            vmem_limit_bytes=vmem_limit,
        ),
        cost_estimate=cost,
    )(scale_smem, labels_col)


def dummy_model_forward(y: jax.Array, scale: jax.Array, num_classes: int | None = None) -> jax.Array:
    """One-hot logits of shape (len(y.ravel()), num_classes) scaled by `scale`.

    Pass `num_classes` as a static int to keep the call jit-able and fully
    asynchronous (recommended). If None, mirrors the PyTorch module's
    `int(labels.max().item()) + 1` (forces a host sync).
    """
    labels = jnp.asarray(y, dtype=jnp.int32).reshape(-1)
    if num_classes is None:
        # TODO(synk): data-dependent output shape requires a host round-trip;
        # prefer passing num_classes explicitly.
        num_classes = int(jax.device_get(labels.max())) + 1
    return _onehot_logits(labels, jnp.asarray(scale, jnp.float32), num_classes=num_classes)


if __name__ == "__main__":
    key = jax.random.PRNGKey(0)

    # Case 1: small batch, 8 labels over 5 classes, scale = 1.0 (as in __init__).
    num_samples = 8
    num_classes_gen = 5
    y = jax.random.randint(key, (num_samples,), 0, num_classes_gen, dtype=jnp.int32)
    y = y.at[0].set(num_classes_gen - 1)  # ensure max class present
    scale = jnp.float32(1.0)

    logits = dummy_model_forward(y, scale, num_classes=num_classes_gen)
    jax.block_until_ready(logits)
    logits_dyn = dummy_model_forward(y, scale)  # dynamic num_classes path
    jax.block_until_ready(logits_dyn)

    ref = jax.nn.one_hot(y, num_classes_gen, dtype=jnp.float32) * scale
    assert logits.shape == ref.shape, (logits.shape, ref.shape)
    assert jnp.allclose(logits, ref), "mismatch vs reference one-hot (static path)"
    assert logits_dyn.shape == ref.shape, (logits_dyn.shape, ref.shape)
    assert jnp.allclose(logits_dyn, ref), "mismatch vs reference one-hot (dynamic path)"

    # Case 2: ragged row count (not a multiple of the 8-row tile) + non-unit scale,
    # exercising the clipped last block and multi-block grid.
    key2 = jax.random.PRNGKey(1)
    n2, c2 = 70, 5
    y2 = jax.random.randint(key2, (n2,), 0, c2, dtype=jnp.int32)
    y2 = y2.at[0].set(c2 - 1)
    scale2 = jnp.float32(2.5)

    logits2 = dummy_model_forward(y2, scale2, num_classes=c2)
    jax.block_until_ready(logits2)
    ref2 = jax.nn.one_hot(y2, c2, dtype=jnp.float32) * scale2
    assert logits2.shape == ref2.shape, (logits2.shape, ref2.shape)
    assert jnp.allclose(logits2, ref2), "mismatch vs reference one-hot (ragged path)"

    print("KERNEL_OK")
</pallas_src>

<mosaic_0001>
module attributes {stable_mosaic.version = 11 : i64} {
  func.func @_onehot_scale_kernel(%arg0: i32, %arg1: memref<1x1xf32, #tpu.memory_space<smem>>, %arg2: memref<8x1xi32, #tpu.memory_space<vmem>>, %arg3: memref<8x5xf32, #tpu.memory_space<vmem>>) attributes {dimension_semantics = [#tpu.dimension_semantics<parallel>], iteration_bounds = array<i64: 1>, scalar_prefetch = 0 : i64, scratch_operands = 0 : i64, tpu.core_type = #tpu.core_type<tc>, window_params = [{transform_indices = @transform_0, window_bounds = array<i64: 1, 1>}, {transform_indices = @transform_1, window_bounds = array<i64: 8, 1>}, {transform_indices = @transform_2, window_bounds = array<i64: 8, 5>}]} {
    %c0 = arith.constant 0 : index
    %c0_0 = arith.constant 0 : index
    %0 = vector.load %arg2[%c0, %c0_0] : memref<8x1xi32, #tpu.memory_space<vmem>>, vector<8x1xi32>
    %1 = tpu.iota {dimensions = array<i32: 1>} : vector<8x5xi32>
    %2 = vector.broadcast %0 : vector<8x1xi32> to vector<8x5xi32>
    %3 = arith.cmpi eq, %1, %2 : vector<8x5xi32>
    %c0_1 = arith.constant 0 : index
    %c0_2 = arith.constant 0 : index
    %4 = memref.load %arg1[%c0_1, %c0_2] : memref<1x1xf32, #tpu.memory_space<smem>>
    %cst = arith.constant 0.000000e+00 : f32
    %5 = vector.broadcast %4 : f32 to vector<8x5xf32>
    %6 = vector.broadcast %cst : f32 to vector<8x5xf32>
    %7 = arith.select %3, %5, %6 : vector<8x5xi1>, vector<8x5xf32>
    %c0_3 = arith.constant 0 : index
    %c0_4 = arith.constant 0 : index
    %8 = vector.load %arg3[%c0_3, %c0_4] : memref<8x5xf32, #tpu.memory_space<vmem>>, vector<8x5xf32>
    tpu.vector_store %arg3[%c0_3, %c0_4], %7 {strides = array<i32>} : memref<8x5xf32, #tpu.memory_space<vmem>>, vector<8x5xf32>,
    return
  }
  func.func @transform_0(%arg0: i32) -> (i32, i32) {
    %c0_i32 = arith.constant 0 : i32
    %c0_i32_0 = arith.constant 0 : i32
    %c0_i32_1 = arith.constant 0 : i32
    return %c0_i32, %c0_i32_0 : i32, i32
  }
  func.func @transform_1(%arg0: i32) -> (i32, i32) {
    %c0_i32 = arith.constant 0 : i32
    %c0_i32_0 = arith.constant 0 : i32
    return %arg0, %c0_i32 : i32, i32
  }
  func.func @transform_2(%arg0: i32) -> (i32, i32) {
    %c0_i32 = arith.constant 0 : i32
    %c0_i32_0 = arith.constant 0 : i32
    return %arg0, %c0_i32 : i32, i32
  }
}

</mosaic_0001>

<bundles_post_ra>
// kernel: _onehot_logits.1
= control target key start
LH: loop header
LB: loop body
LE: loop exit
PB: predicated region body
PF: predicated region fallthrough
CT: control target
= control target key end

     0   :  { %s101_s0 = inlined_call_operand.<no memory space> [shape: f32[1,1], index: 0, kind: input, shape index: {}]   ;;  %s102_s1 = inlined_call_operand.vmem [shape: s32[8,1], index: 1, kind: input, shape index: {}]   ;;  %s103_s2 = inlined_call_operand.hbm [shape: f32[8,5], index: 2, kind: output, shape index: {}]  }
   0x1   :  { %v13_v0 = vld [vmem:[%s102_s1] sm:$0xff] }
   0x2   :  { %8 = vsyncpa [#allocation4], 0  ;;  %v66_v1 = vmov 0   ;;  %v14_v2 = vlaneseq  ;;  %s67_s11 = smov [#allocation3]   ;;  %v21_v4 = vstv %s101_s0  ;;  %vm23_vm0 = vcmask 39936  }
   0x3   :  { %41 = vset.pattern.permute.xlu0 %v66_v1  ;;  %s31_s12 = sshll.u32 %s67_s11, 4  ;;  %s32_s12 = int_to_ptr.vmem [resolvable:$true] %s31_s12 }
   0x4   :  { %17 = vperm.xlu0 %41, %v13_v0   ;;  %v15_v3 = vand.u32 127, %v14_v2  ;;  %s42_s15 = scalar_lea.vmem %s32_s12, 128  ;;  %p47_p1 = scmp.lt.s32.totalorder %s32_s12, %s32_s12 }
   0x5   :  { %p43_p0 = scmp.ne.s32.totalorder %s32_s12, %s42_s15  ;;  %p48_p2 = scmp.lt.s32.totalorder %s42_s15, %s42_s15 }
   0x7   :  { %p49_p3 = por %p48_p2, %p47_p1 }
   0x9   :  { %p50_p4 = pnand %p49_p3, %p43_p0 }
  0x83   :  { %v18_v5 = vpop.permute.xlu0 %17 }
  0x84   :  { %vm19_vm1 = vcmp.eq.s32.totalorder %v15_v3, %v18_v5 }
  0x85   :  { %v22_v6 = vsel %vm19_vm1, %v21_v4, 0.0 }
  0x86   :  { %24 = vst.msk [vmem:[#allocation3] sm:$0xff] %vm23_vm0, %v22_v6 }
  0x87   :  { %53 = shalt.err (!%p50_p4)
}
  0x88   :  { %s54_s17 = scalar_lea.hbm %s103_s2, 128 }
  0x89   :  { %p55_p5 = scmp.ne.s32.totalorder %s103_s2, %s54_s17  ;;  %p58_p6 = scmp.lt.u32.totalorder %s54_s17, %s103_s2 }
  0x8b   :  { %p60_p7 = pnand %p58_p6, %p55_p5 }
  0x8d   :  { %63 = shalt.err (!%p60_p7)
}
  0x8e   :  { %34 = dma.vmem_to_hbm [thread:$0]  %s32_s12, 128, %s103_s2, [#allocation4]  }
  0x8f   :  { %64 = dma.done.wait [#allocation4], 128  }
  0x90   :  { %65 = vsyncadd [#allocation4], 4294967168 }
  0x91   :  { %38 = vsyncpa [#allocation4], 1 }

</bundles_post_ra>
